<compile_context>
chip_gen: v6e
topology: v6e:2x2x1
jax: 0.10.0
libtpu: 0.0.40
codegen_flags: <defaults>
</compile_context>

<pallas_src>
import functools

import jax
import jax.numpy as jnp
from jax.experimental import pallas as pl
from jax.experimental.pallas import tpu as pltpu

D_IN = 32
D_HID = 64
D_OUT = 16
HID_PAD = 128  # hidden dim padded to one full lane width (VMEM-only padding)


def mlp_kernel(x_ref, w1_ref, b1_ref, w2_ref, b2_ref, o_ref):
    # Layer 0: Linear(D_IN -> HID_PAD). Columns >= D_HID of w1/b1 are zero.
    h = jnp.dot(x_ref[...], w1_ref[...],
                preferred_element_type=jnp.float32,
                precision=jax.lax.Precision.HIGHEST)
    # Layer 1: ReLU (bias broadcasts over the batch tile).
    h = jnp.maximum(h + b1_ref[...], 0.0)
    # Layer 2: Linear(HID_PAD -> D_OUT). Rows >= D_HID of w2 are zero, so the
    # padded hidden lanes contribute nothing. Store the narrow (tb, 16) tile
    # directly -- no padded writeback.
    out = jnp.dot(h, w2_ref[...],
                  preferred_element_type=jnp.float32,
                  precision=jax.lax.Precision.HIGHEST)
    o_ref[...] = (out + b2_ref[...]).astype(o_ref.dtype)


def prepare_params(w1, b1, w2, b2):
    """One-time (load-time) padding of the tiny parameter tensors.

    Only the hidden dimension is padded (to 128 lanes); the output dim stays
    at D_OUT so the kernel writes exactly the real output columns.
    """
    w1p = jnp.zeros((D_IN, HID_PAD), jnp.float32).at[:, :D_HID].set(
        w1.astype(jnp.float32))
    b1p = jnp.zeros((1, HID_PAD), jnp.float32).at[:, :D_HID].set(
        b1.reshape(1, -1).astype(jnp.float32))
    w2p = jnp.zeros((HID_PAD, D_OUT), jnp.float32).at[:D_HID, :].set(
        w2.astype(jnp.float32))
    b2p = b2.reshape(1, D_OUT).astype(jnp.float32)
    return w1p, b1p, w2p, b2p


@functools.partial(jax.jit, static_argnames=("tb",))
def model_forward(x, w1p, b1p, w2p, b2p, *, tb=2048):
    """Fused sequential forward: Linear -> ReLU -> Linear.

    x: (batch, D_IN) float32.  w*/b* are the pre-padded params from
    prepare_params.  tb is the batch tile (rows per grid step).
    """
    batch = x.shape[0]

    # Clamp the tile so (a) it's a multiple of 8 (f32 sublane) and (b) the
    # grid has >= 2 steps whenever the batch allows, so the "parallel" batch
    # axis can shard across both TensorCores on v7x.
    tb = int(max(8, min(tb, ((batch + 1) // 2 + 7) // 8 * 8)))
    grid = pl.cdiv(batch, tb)

    # Real footprint: read x + params once, write the narrow output once.
    flops = 2 * batch * (D_IN * HID_PAD + HID_PAD * D_OUT)
    bytes_accessed = (x.size * 4 + w1p.size * 4 + b1p.size * 4
                      + w2p.size * 4 + b2p.size * 4
                      + batch * D_OUT * 4)

    out = pl.pallas_call(
        mlp_kernel,
        out_shape=jax.ShapeDtypeStruct((batch, D_OUT), jnp.float32),
        grid=(grid,),
        in_specs=[
            pl.BlockSpec((tb, D_IN), lambda i: (i, 0)),       # activations: tiled
            pl.BlockSpec((D_IN, HID_PAD), lambda i: (0, 0)),  # params: VMEM-resident
            pl.BlockSpec((1, HID_PAD), lambda i: (0, 0)),
            pl.BlockSpec((HID_PAD, D_OUT), lambda i: (0, 0)),
            pl.BlockSpec((1, D_OUT), lambda i: (0, 0)),
        ],
        out_specs=pl.BlockSpec((tb, D_OUT), lambda i: (i, 0)),  # narrow direct store
        compiler_params=pltpu.CompilerParams(
            dimension_semantics=("parallel",)),
        cost_estimate=pl.CostEstimate(
            flops=flops, transcendentals=0, bytes_accessed=bytes_accessed),
    )(x, w1p, b1p, w2p, b2p)
    return out


def reference_forward_f32(x, w1, b1, w2, b2):
    h = jnp.maximum(
        jnp.dot(x, w1, precision=jax.lax.Precision.HIGHEST) + b1, 0.0)
    return jnp.dot(h, w2, precision=jax.lax.Precision.HIGHEST) + b2


if __name__ == "__main__":
    key = jax.random.PRNGKey(0)
    kx, kw1, kb1, kw2, kb2 = jax.random.split(key, 5)

    # Shapes match nn.Linear(D_IN, D_HID), nn.Linear(D_HID, D_OUT); weights
    # are stored pre-transposed as [in, out].
    w1 = jax.random.normal(kw1, (D_IN, D_HID), dtype=jnp.float32) * 0.1
    b1 = jax.random.normal(kb1, (1, D_HID), dtype=jnp.float32) * 0.1
    w2 = jax.random.normal(kw2, (D_HID, D_OUT), dtype=jnp.float32) * 0.1
    b2 = jax.random.normal(kb2, (1, D_OUT), dtype=jnp.float32) * 0.1
    params = prepare_params(w1, b1, w2, b2)  # load-time, outside the hot path

    # Test 1: batch divisible by the tile (tb=16 -> grid=2, multi-step pipeline).
    BATCH = 32
    x = jax.random.normal(kx, (BATCH, D_IN), dtype=jnp.float32)
    out = jax.block_until_ready(model_forward(x, *params, tb=16))
    assert out.shape == (BATCH, D_OUT)
    ref = reference_forward_f32(x, w1, b1, w2, b2)
    assert jnp.allclose(out, ref, atol=1e-4, rtol=1e-4), "mismatch (even batch)"

    # Test 2: ragged batch (grid=3 with a partial last tile) -- exercises
    # Pallas's masked handling of the final block, which replaces the old
    # wrapper-side jnp.pad of x.
    BATCH2 = 40
    x2 = jax.random.normal(kx, (BATCH2, D_IN), dtype=jnp.float32)
    out2 = jax.block_until_ready(model_forward(x2, *params, tb=16))
    assert out2.shape == (BATCH2, D_OUT)
    ref2 = reference_forward_f32(x2, w1, b1, w2, b2)
    assert jnp.allclose(out2, ref2, atol=1e-4, rtol=1e-4), "mismatch (ragged batch)"

    print("KERNEL_OK")
</pallas_src>

<mosaic_0001>
module attributes {stable_mosaic.version = 11 : i64} {
  func.func @mlp_kernel(%arg0: i32, %arg1: memref<16x32xf32, #tpu.memory_space<vmem>>, %arg2: memref<32x128xf32, #tpu.memory_space<vmem>>, %arg3: memref<1x128xf32, #tpu.memory_space<vmem>>, %arg4: memref<128x16xf32, #tpu.memory_space<vmem>>, %arg5: memref<1x16xf32, #tpu.memory_space<vmem>>, %arg6: memref<16x16xf32, #tpu.memory_space<vmem>>) attributes {dimension_semantics = [#tpu.dimension_semantics<parallel>], iteration_bounds = array<i64: 2>, scalar_prefetch = 0 : i64, scratch_operands = 0 : i64, tpu.core_type = #tpu.core_type<tc>, window_params = [{transform_indices = @transform_0, window_bounds = array<i64: 16, 32>}, {pipeline_mode = #tpu.pipeline_mode<synchronous>, transform_indices = @transform_1, window_bounds = array<i64: 32, 128>}, {pipeline_mode = #tpu.pipeline_mode<synchronous>, transform_indices = @transform_2, window_bounds = array<i64: 1, 128>}, {pipeline_mode = #tpu.pipeline_mode<synchronous>, transform_indices = @transform_3, window_bounds = array<i64: 128, 16>}, {pipeline_mode = #tpu.pipeline_mode<synchronous>, transform_indices = @transform_4, window_bounds = array<i64: 1, 16>}, {transform_indices = @transform_5, window_bounds = array<i64: 16, 16>}]} {
    %c0 = arith.constant 0 : index
    %c0_0 = arith.constant 0 : index
    %0 = vector.load %arg1[%c0, %c0_0] : memref<16x32xf32, #tpu.memory_space<vmem>>, vector<16x32xf32>
    %c0_1 = arith.constant 0 : index
    %c0_2 = arith.constant 0 : index
    %1 = vector.load %arg2[%c0_1, %c0_2] : memref<32x128xf32, #tpu.memory_space<vmem>>, vector<32x128xf32>
    %cst = arith.constant dense<0.000000e+00> : vector<16x128xf32>
    %2 = tpu.matmul %0, %1, %cst {dimension_numbers = #tpu.dot_dimension_numbers<[1], [0], [0], [1], [0, 0, 1, 1], [], []>, precision = #tpu.contract_precision<fp32>} : vector<16x32xf32>, vector<32x128xf32>, vector<16x128xf32> -> vector<16x128xf32>
    %c0_3 = arith.constant 0 : index
    %c0_4 = arith.constant 0 : index
    %3 = vector.load %arg3[%c0_3, %c0_4] : memref<1x128xf32, #tpu.memory_space<vmem>>, vector<1x128xf32>
    %4 = vector.broadcast %3 : vector<1x128xf32> to vector<16x128xf32>
    %5 = arith.addf %2, %4 : vector<16x128xf32>
    %cst_5 = arith.constant 0.000000e+00 : f32
    %6 = vector.broadcast %cst_5 : f32 to vector<16x128xf32>
    %7 = arith.maximumf %5, %6 : vector<16x128xf32>
    %c0_6 = arith.constant 0 : index
    %c0_7 = arith.constant 0 : index
    %8 = vector.load %arg4[%c0_6, %c0_7] : memref<128x16xf32, #tpu.memory_space<vmem>>, vector<128x16xf32>
    %cst_8 = arith.constant dense<0.000000e+00> : vector<16x16xf32>
    %9 = tpu.matmul %7, %8, %cst_8 {dimension_numbers = #tpu.dot_dimension_numbers<[1], [0], [0], [1], [0, 0, 1, 1], [], []>, precision = #tpu.contract_precision<fp32>} : vector<16x128xf32>, vector<128x16xf32>, vector<16x16xf32> -> vector<16x16xf32>
    %c0_9 = arith.constant 0 : index
    %c0_10 = arith.constant 0 : index
    %10 = vector.load %arg5[%c0_9, %c0_10] : memref<1x16xf32, #tpu.memory_space<vmem>>, vector<1x16xf32>
    %11 = vector.broadcast %10 : vector<1x16xf32> to vector<16x16xf32>
    %12 = arith.addf %9, %11 : vector<16x16xf32>
    %c0_11 = arith.constant 0 : index
    %c0_12 = arith.constant 0 : index
    %13 = vector.load %arg6[%c0_11, %c0_12] : memref<16x16xf32, #tpu.memory_space<vmem>>, vector<16x16xf32>
    tpu.vector_store %arg6[%c0_11, %c0_12], %12 {strides = array<i32>} : memref<16x16xf32, #tpu.memory_space<vmem>>, vector<16x16xf32>,
    return
  }
  func.func @transform_0(%arg0: i32) -> (i32, i32) {
    %c0_i32 = arith.constant 0 : i32
    %c0_i32_0 = arith.constant 0 : i32
    return %arg0, %c0_i32 : i32, i32
  }
  func.func @transform_1(%arg0: i32) -> (i32, i32) {
    %c0_i32 = arith.constant 0 : i32
    %c0_i32_0 = arith.constant 0 : i32
    %c0_i32_1 = arith.constant 0 : i32
    return %c0_i32, %c0_i32_0 : i32, i32
  }
  func.func @transform_2(%arg0: i32) -> (i32, i32) {
    %c0_i32 = arith.constant 0 : i32
    %c0_i32_0 = arith.constant 0 : i32
    %c0_i32_1 = arith.constant 0 : i32
    return %c0_i32, %c0_i32_0 : i32, i32
  }
  func.func @transform_3(%arg0: i32) -> (i32, i32) {
    %c0_i32 = arith.constant 0 : i32
    %c0_i32_0 = arith.constant 0 : i32
    %c0_i32_1 = arith.constant 0 : i32
    return %c0_i32, %c0_i32_0 : i32, i32
  }
  func.func @transform_4(%arg0: i32) -> (i32, i32) {
    %c0_i32 = arith.constant 0 : i32
    %c0_i32_0 = arith.constant 0 : i32
    %c0_i32_1 = arith.constant 0 : i32
    return %c0_i32, %c0_i32_0 : i32, i32
  }
  func.func @transform_5(%arg0: i32) -> (i32, i32) {
    %c0_i32 = arith.constant 0 : i32
    %c0_i32_0 = arith.constant 0 : i32
    return %arg0, %c0_i32 : i32, i32
  }
}

</mosaic_0001>

<bundles_post_ra>
// kernel: model_forward.1
= control target key start
LH: loop header
LB: loop body
LE: loop exit
PB: predicated region body
PF: predicated region fallthrough
CT: control target
= control target key end

     0   :  { %s2023_s18 = smov 0   ;;  %s2534_s0 = inlined_call_operand.vmem [shape: f32[32,32], index: 0, kind: input, shape index: {}]   ;;  %s2535_s1 = inlined_call_operand.vmem [shape: f32[32,128], index: 1, kind: input, shape index: {}]   ;;  %s2536_s2 = inlined_call_operand.vmem [shape: f32[1,128], index: 2, kind: input, shape index: {}]   ;;  %s2537_s3 = inlined_call_operand.vmem [shape: f32[128,16], index: 3, kind: input, shape index: {}]   ;;  %s2538_s4 = inlined_call_operand.vmem [shape: f32[1,16], index: 4, kind: input, shape index: {}]   ;;  %s2539_s5 = inlined_call_operand.vmem [shape: f32[32,16], index: 5, kind: output, shape index: {}]  }
   0x1 LB: > { %s1544_s19 = sadd.s32 4294967295, %s1991_s18   ;;  %p1548_p0 = scmp.ge.s32.totalorder %s1991_s18, 1  ;;  %s1991_s18 = sphi %s2023_s18, %s15_s18  }
   0x2   : > { %p188_p1 = scmp.lt.s32.totalorder %s1991_s18, 3 }
   0x4   : > { %p189_p2 = pnand %p1548_p0, %p188_p1 }
   0x6   : > { %192 = sbr.rel (%p189_p2) target bundleno = 527 (0x20f), region = 40 }
   0xb   : > { %v233_v0 = vld [vmem:[%s2535_s1 + $0x18] sm:$0xff]  ;;  %v232_v1 = vld [vmem:[%s2535_s1 + $0x10] sm:$0xff]  ;;  %v231_v2 = vld [vmem:[%s2535_s1 + $0x8] sm:$0xff]  ;;  %s1549_s26 = sshll.u32 %s1544_s19, 1  ;;  %vm241_vm0 = vcmask 261120   ;;  %vm1485_vm1 = vcmask 130048  }
   0xc   : > { %v2040_v3 = vand.u32 4294901760, %v233_v0  ;;  %v2042_v4 = vand.u32 4294901760, %v232_v1  ;;  %v2044_v5 = vand.u32 4294901760, %v231_v2  ;;  %v230_v6 = vld [vmem:[%s2535_s1] sm:$0xff]  ;;  %p217_p3 = scmp.lt.s32.totalorder %s1549_s26, 3  ;;  %v793_v37 = vld [vmem:[%s2537_s3 + $0x78] sm:$0xff] }
   0xd   : > { %v2049_v7 = vand.u32 4294901760, %v230_v6  ;;  %v792_v39 = vld [vmem:[%s2537_s3 + $0x70] sm:$0xff]  ;;  %v2106_v40 = vand.u32 4294901760, %v793_v37  ;;  %v791_v41 = vld [vmem:[%s2537_s3 + $0x68] sm:$0xff]  ;;  %v790_v56 = vld [vmem:[%s2537_s3 + $0x60] sm:$0xff] }
   0xe   : > { %1701 = vmatprep.subr.mxu0 %v2040_v3  ;;  %v363_v8 = vsub.f32 %v233_v0, %v2040_v3  ;;  %v370_v9 = vsub.f32 %v232_v1, %v2042_v4  ;;  %v2055_v10 = vsub.f32 %v231_v2, %v2044_v5  ;;  %s2577_s26 = smov (!%p217_p3, %s1549_s26), 3  ;;  %v2113_v42 = vand.u32 4294901760, %v792_v39  ;;  %v789_v58 = vld [vmem:[%s2537_s3 + $0x58] sm:$0xff]  ;;  %v788_v61 = vld [vmem:[%s2537_s3 + $0x50] sm:$0xff]  ;;  %v787_v1 = vld [vmem:[%s2537_s3 + $0x48] sm:$0xff] }
   0xf   : > { %1702 = vmatpush3.msra.mxu0 %v2040_v3  ;;  %v2061_v11 = vsub.f32 %v230_v6, %v2049_v7  ;;  %s1550_s29 = sshll.u32 %s2577_s26, 3  ;;  %v2119_v43 = vsub.f32 %v793_v37, %v2106_v40  ;;  %v2121_v44 = vand.u32 4294901760, %v791_v41  ;;  %v2179_v57 = vand.u32 4294901760, %v790_v56  ;;  %v786_v6 = vld [vmem:[%s2537_s3 + $0x40] sm:$0xff] }
  0x10   : > { %v2063_v12 = vand.u32 4294901760, %v363_v8  ;;  %1703 = vmatprep.subr.mxu0 %v2042_v4  ;;  %v2066_v13 = vand.u32 4294901760, %v370_v9  ;;  %v2069_v14 = vand.u32 4294901760, %v2055_v10  ;;  %s220_s7 = scalar_lea.vmem %s2534_s0, %s1550_s29  ;;  %v2128_v45 = vsub.f32 %v792_v39, %v2113_v42  ;;  %s226_s25 = scalar_lea.vmem %s2539_s5, %s1550_s29 }
  0x11   : > { %1704 = vmatpush3.msra.mxu0 %v2042_v4  ;;  %v2074_v15 = vand.u32 4294901760, %v2061_v11  ;;  %v228_v19 = vld [vmem:[%s220_s7] sm:$0xff]  ;;  %v229_v20 = vld [vmem:[%s220_s7 + $0x8] sm:$0xff]  ;;  %v2133_v46 = vand.u32 4294901760, %v2119_v43  ;;  %v2136_v47 = vsub.f32 %v791_v41, %v2121_v44  ;;  %v2185_v59 = vsub.f32 %v790_v56, %v2179_v57 }
  0x12   : > { %v365_v16 = vsub.f32 %v363_v8, %v2063_v12  ;;  %v372_v17 = vsub.f32 %v370_v9, %v2066_v13  ;;  %1705 = vmatprep.subr.mxu0 %v2044_v5  ;;  %v379_v18 = vsub.f32 %v2055_v10, %v2069_v14  ;;  %v243_v21 = vsel %vm241_vm0, %v228_v19, 0 }
  0x13   : > { %1706 = vmatpush3.msra.mxu0 %v2044_v5  ;;  %v246_v22 = vsel %vm241_vm0, %v229_v20, 0  ;;  %v386_v25 = vsub.f32 %v2061_v11, %v2074_v15  ;;  %v2090_v26 = vand.u32 4294901760, %v243_v21  ;;  %v2141_v48 = vand.u32 4294901760, %v2128_v45 }
  0x14   : > { %v366_v23 = vand.u32 4294901760, %v365_v16  ;;  %v373_v24 = vand.u32 4294901760, %v372_v17  ;;  %1707 = vmatprep.subr.mxu0 %v2049_v7  ;;  %v2093_v27 = vand.u32 4294901760, %v246_v22  ;;  %v380_v28 = vand.u32 4294901760, %v379_v18  ;;  %v784_v18 = vld [vmem:[%s2537_s3 + $0x30] sm:$0xff] }
  0x15   : > { %1708 = vmatpush3.msra.mxu0 %v2049_v7  ;;  %v318_v29 = vsub.f32 %v243_v21, %v2090_v26  ;;  %1720 = vmatprep.mubr.f32.mxu1 %v2090_v26  ;;  %v387_v31 = vand.u32 4294901760, %v386_v25  ;;  %v906_v49 = vsub.f32 %v2119_v43, %v2133_v46  ;;  %v2150_v50 = vand.u32 4294901760, %v2136_v47 }
  0x16   : > { %1712 = vmatprep.subr.mxu1 %v366_v23  ;;  %1723 = vmatprep.subr.mxu0 %v363_v8  ;;  %v328_v30 = vsub.f32 %v246_v22, %v2093_v27  ;;  %v913_v51 = vsub.f32 %v2128_v45, %v2141_v48  ;;  %v2187_v60 = vand.u32 4294901760, %v789_v58  ;;  %v2195_v62 = vand.u32 4294901760, %v2185_v59 }
  0x17   : > { %1713 = vmatpush3.msra.mxu1 %v366_v23  ;;  %v319_v32 = vand.u32 4294901760, %v318_v29  ;;  %v907_v52 = vand.u32 4294901760, %v906_v49  ;;  %v920_v53 = vsub.f32 %v2136_v47, %v2150_v50  ;;  %v2200_v0 = vand.u32 4294901760, %v788_v61 }
  0x18   : > { %1714 = vmatprep.subr.mxu1 %v373_v24  ;;  %v329_v33 = vand.u32 4294901760, %v328_v30  ;;  %v914_v54 = vand.u32 4294901760, %v913_v51  ;;  %v2198_v63 = vsub.f32 %v789_v58, %v2187_v60  ;;  %v927_v2 = vsub.f32 %v2185_v59, %v2195_v62  ;;  %v780_v51 = vld [vmem:[%s2537_s3 + $0x10] sm:$0xff]  ;;  %v779_v58 = vld [vmem:[%s2537_s3 + $0x8] sm:$0xff] }
  0x19   : > { %1715 = vmatpush3.msra.mxu1 %v373_v24  ;;  %v320_v34 = vsub.f32 %v318_v29, %v319_v32  ;;  %v921_v55 = vand.u32 4294901760, %v920_v53  ;;  %v2256_v22 = vand.u32 4294901760, %v784_v18  ;;  %v783_v24 = vld [vmem:[%s2537_s3 + $0x28] sm:$0xff] }
  0x1a   : > { %1716 = vmatprep.subr.mxu1 %v380_v28  ;;  %v330_v35 = vsub.f32 %v328_v30, %v329_v33 }
  0x1b   : > { %1717 = vmatpush3.msra.mxu1 %v380_v28  ;;  %v321_v36 = vand.u32 4294901760, %v320_v34  ;;  %v2272_v28 = vand.u32 4294901760, %v783_v24 }
  0x1c   : > { %1718 = vmatprep.subr.mxu1 %v387_v31  ;;  %v331_v38 = vand.u32 4294901760, %v330_v35 }
  0x1d   : > { %1719 = vmatpush3.msra.mxu1 %v387_v31  ;;  %1709 = vmatprep.mubr.f32.mxu0 %v321_v36  ;;  %v781_v36 = vld [vmem:[%s2537_s3 + $0x18] sm:$0xff] }
  0x1e   : > { %1734 = vmatprep.subr.mxu1 %v2040_v3  ;;  %1710 = vmatmul.mubr.f32.vlgmr.msra.gmra.mxu0 %v331_v38  ;;  %v2305_v49 = vand.u32 4294901760, %v781_v36 }
  0x1f   : > { %1721 = vmatmul.mubr.f32.vlgmr.msra.gmra.mxu1 %v2093_v27  ;;  %1724 = vmatpush3.msra.mxu0 %v363_v8 }
  0x20   : > { %1735 = vmatpush3.msra.mxu1 %v2040_v3  ;;  %1725 = vmatprep.subr.mxu0 %v370_v9  ;;  %v2320_v56 = vsub.f32 %v781_v36, %v2305_v49 }
  0x21   : > { %1736 = vmatprep.subr.mxu1 %v2042_v4  ;;  %1726 = vmatpush3.msra.mxu0 %v370_v9 }
  0x22   : > { %1737 = vmatpush3.msra.mxu1 %v2042_v4  ;;  %1727 = vmatprep.subr.mxu0 %v2055_v10 }
  0x23   : > { %1738 = vmatprep.subr.mxu1 %v2044_v5  ;;  %1728 = vmatpush3.msra.mxu0 %v2055_v10 }
  0x24   : > { %1739 = vmatpush3.msra.mxu1 %v2044_v5  ;;  %1729 = vmatprep.subr.mxu0 %v2061_v11 }
  0x25   : > { %1740 = vmatprep.subr.mxu1 %v2049_v7  ;;  %1730 = vmatpush3.msra.mxu0 %v2061_v11  ;;  %v2231_v11 = vand.u32 4294901760, %v786_v6 }
  0x26   : > { %1731 = vmatprep.mubr.f32.mxu0 %v318_v29  ;;  %1741 = vmatpush3.msra.mxu1 %v2049_v7 }
  0x27   : > { %1732 = vmatmul.mubr.f32.vlgmr.msra.gmra.mxu0 %v328_v30  ;;  %1742 = vmatprep.mubr.f32.mxu1 %v319_v32  ;;  %v2245_v17 = vsub.f32 %v786_v6, %v2231_v11  ;;  %v782_v30 = vld [vmem:[%s2537_s3 + $0x20] sm:$0xff]  ;;  %v2331_v6 = vand.u32 4294901760, %v779_v58 }
  0x28   : > { %1745 = vmatprep.subr.mxu0 %v2063_v12  ;;  %1756 = vmatprep.subr.mxu1 %v2040_v3  ;;  %v2289_v34 = vand.u32 4294901760, %v782_v30 }
  0x29   : > { %1743 = vmatmul.mubr.f32.vlgmr.msra.gmra.mxu1 %v329_v33  ;;  %1746 = vmatpush3.msra.mxu0 %v2063_v12  ;;  %v785_v12 = vld [vmem:[%s2537_s3 + $0x38] sm:$0xff]  ;;  %v2260_v23 = vand.u32 4294901760, %v2245_v17  ;;  %v2287_v33 = vsub.f32 %v783_v24, %v2272_v28 }
  0x2a   : > { %1757 = vmatpush3.msra.mxu1 %v2040_v3  ;;  %1747 = vmatprep.subr.mxu0 %v2066_v13  ;;  %v2210_v3 = vand.u32 4294901760, %v2198_v63  ;;  %v2242_v16 = vand.u32 4294901760, %v785_v12  ;;  %v2302_v41 = vsub.f32 %v782_v30, %v2289_v34 }
  0x2b   : > { %1758 = vmatprep.subr.mxu1 %v2042_v4  ;;  %1748 = vmatpush3.msra.mxu0 %v2066_v13  ;;  %2558 = vst [vmem:[#allocation2_spill] sm:$0xff] %v2260_v23  ;;  %v955_v29 = vsub.f32 %v2245_v17, %v2260_v23  ;;  %v2299_v39 = vand.u32 4294901760, %v2287_v33 }
  0x2c   : > { %1759 = vmatpush3.msra.mxu1 %v2042_v4  ;;  %1749 = vmatprep.subr.mxu0 %v2069_v14  ;;  %v2213_v4 = vsub.f32 %v788_v61, %v2200_v0  ;;  %v934_v8 = vsub.f32 %v2198_v63, %v2210_v3  ;;  %v2254_v21 = vsub.f32 %v785_v12, %v2242_v16 }
  0x2d   : > { %1760 = vmatprep.subr.mxu1 %v2044_v5  ;;  %1750 = vmatpush3.msra.mxu0 %v2069_v14  ;;  %v956_v35 = vand.u32 4294901760, %v955_v29  ;;  %2561 = vst [vmem:[#allocation5_spill] sm:$0xff] %v2299_v39  ;;  %v976_v53 = vsub.f32 %v2287_v33, %v2299_v39 }
  0x2e   : > { %1761 = vmatpush3.msra.mxu1 %v2044_v5  ;;  %1751 = vmatprep.subr.mxu0 %v2074_v15  ;;  %v2215_v5 = vand.u32 4294901760, %v787_v1  ;;  %v2225_v9 = vand.u32 4294901760, %v2213_v4  ;;  %v935_v13 = vand.u32 4294901760, %v934_v8  ;;  %v778_v8 = vld [vmem:[%s2537_s3] sm:$0xff] }
  0x2f   : > { %1762 = vmatprep.subr.mxu1 %v2049_v7  ;;  %1752 = vmatpush3.msra.mxu0 %v2074_v15  ;;  %v977_v61 = vand.u32 4294901760, %v976_v53 }
  0x30   : > { %1753 = vmatprep.mubr.f32.mxu0 %v2090_v26  ;;  %1763 = vmatpush3.msra.mxu1 %v2049_v7  ;;  %v928_v7 = vand.u32 4294901760, %v927_v2  ;;  %v2228_v10 = vsub.f32 %v787_v1, %v2215_v5  ;;  %v941_v14 = vsub.f32 %v2213_v4, %v2225_v9 }
  0x31   : > { %1764 = vmatprep.mubr.f32.mxu1 %v2090_v26  ;;  %1754 = vmatmul.mubr.f32.vlgmr.msra.gmra.mxu0 %v2093_v27  ;;  %v2267_v26 = vand.u32 4294901760, %v2254_v21 }
  0x32   : > { %1765 = vmatmul.mubr.f32.vlgmr.msra.gmra.mxu1 %v2093_v27  ;;  %1802 = vmatprep.subr.mxu1 %v907_v52  ;;  %v2240_v15 = vand.u32 4294901760, %v2228_v10  ;;  %v942_v19 = vand.u32 4294901760, %v941_v14  ;;  %v2270_v27 = vsub.f32 %v784_v18, %v2256_v22  ;;  %v2345_v14 = vsub.f32 %v779_v58, %v2331_v6 }
  0x33   : > { %1767 = vmatprep.subr.mxu0 %v2106_v40  ;;  %1803 = vmatpush3.msra.mxu1 %v907_v52  ;;  %2559 = vst [vmem:[#allocation3_spill] sm:$0xff] %v2267_v26  ;;  %v962_v31 = vsub.f32 %v2254_v21, %v2267_v26  ;;  %v2347_v18 = vand.u32 4294901760, %v778_v8 }
  0x34   : > { %1768 = vmatpush3.msra.mxu0 %v2106_v40  ;;  %1804 = vmatprep.subr.mxu1 %v914_v54  ;;  %v948_v20 = vsub.f32 %v2228_v10, %v2240_v15  ;;  %v2284_v32 = vand.u32 4294901760, %v2270_v27  ;;  %v2356_v24 = vand.u32 4294901760, %v2345_v14 }
  0x35   : > { %1769 = vmatprep.subr.mxu0 %v2113_v42  ;;  %1805 = vmatpush3.msra.mxu1 %v914_v54  ;;  %v963_v37 = vand.u32 4294901760, %v962_v31  ;;  %v2314_v54 = vand.u32 4294901760, %v2302_v41 }
  0x36   : > { %1770 = vmatpush3.msra.mxu0 %v2113_v42  ;;  %1806 = vmatprep.subr.mxu1 %v921_v55  ;;  %v949_v25 = vand.u32 4294901760, %v948_v20  ;;  %2560 = vst [vmem:[#allocation4_spill] sm:$0xff] %v2284_v32  ;;  %v969_v38 = vsub.f32 %v2270_v27, %v2284_v32  ;;  %2565 = vst [vmem:[#allocation9_spill] sm:$0xff] %v2356_v24  ;;  %v1004_v31 = vsub.f32 %v2345_v14, %v2356_v24 }
  0x37   : > { %1771 = vmatprep.subr.mxu0 %v2121_v44  ;;  %1807 = vmatpush3.msra.mxu1 %v921_v55  ;;  %2562 = vst [vmem:[#allocation6_spill] sm:$0xff] %v2314_v54  ;;  %v2316_v55 = vand.u32 4294901760, %v780_v51  ;;  %v983_v1 = vsub.f32 %v2302_v41, %v2314_v54 }
  0x38   : > { %1772 = vmatpush3.msra.mxu0 %v2121_v44  ;;  %1808 = vmatprep.subr.mxu1 %v928_v7  ;;  %v970_v52 = vand.u32 4294901760, %v969_v38  ;;  %v1005_v36 = vand.u32 4294901760, %v1004_v31 }
  0x39   : > { %1773 = vmatprep.subr.mxu0 %v2179_v57  ;;  %1809 = vmatpush3.msra.mxu1 %v928_v7  ;;  %v2329_v2 = vsub.f32 %v780_v51, %v2316_v55  ;;  %v2335_v7 = vand.u32 4294901760, %v2320_v56  ;;  %v984_v12 = vand.u32 4294901760, %v983_v1 }
  0x3a   : > { %1774 = vmatpush3.msra.mxu0 %v2179_v57  ;;  %1810 = vmatprep.subr.mxu1 %v935_v13 }
  0x3b   : > { %1775 = vmatprep.subr.mxu0 %v2187_v60  ;;  %1811 = vmatpush3.msra.mxu1 %v935_v13  ;;  %2563 = vst [vmem:[#allocation7_spill] sm:$0xff] %v2335_v7  ;;  %v2342_v13 = vand.u32 4294901760, %v2329_v2 }
  0x3c   : > { %1776 = vmatpush3.msra.mxu0 %v2187_v60  ;;  %1812 = vmatprep.subr.mxu1 %v942_v19 }
  0x3d   : > { %1777 = vmatprep.subr.mxu0 %v2200_v0  ;;  %1813 = vmatpush3.msra.mxu1 %v942_v19  ;;  %2564 = vst [vmem:[#allocation8_spill] sm:$0xff] %v2342_v13  ;;  %v990_v19 = vsub.f32 %v2320_v56, %v2335_v7  ;;  %v997_v20 = vsub.f32 %v2329_v2, %v2342_v13 }
  0x3e   : > { %1778 = vmatpush3.msra.mxu0 %v2200_v0  ;;  %1814 = vmatprep.subr.mxu1 %v949_v25 }
  0x3f   : > { %1779 = vmatprep.subr.mxu0 %v2215_v5  ;;  %1815 = vmatpush3.msra.mxu1 %v949_v25  ;;  %v2359_v25 = vsub.f32 %v778_v8, %v2347_v18  ;;  %v991_v29 = vand.u32 4294901760, %v990_v19  ;;  %v998_v30 = vand.u32 4294901760, %v997_v20 }
  0x40   : > { %1780 = vmatpush3.msra.mxu0 %v2215_v5  ;;  %1816 = vmatprep.subr.mxu1 %v956_v35 }
  0x41   : > { %1781 = vmatprep.subr.mxu0 %v2231_v11  ;;  %1817 = vmatpush3.msra.mxu1 %v956_v35  ;;  %v2366_v35 = vand.u32 4294901760, %v2359_v25 }
  0x42   : > { %1782 = vmatpush3.msra.mxu0 %v2231_v11  ;;  %1818 = vmatprep.subr.mxu1 %v963_v37 }
  0x43   : > { %1783 = vmatprep.subr.mxu0 %v2242_v16  ;;  %1819 = vmatpush3.msra.mxu1 %v963_v37  ;;  %2566 = vst [vmem:[#allocation10_spill] sm:$0xff] %v2366_v35  ;;  %v1011_v37 = vsub.f32 %v2359_v25, %v2366_v35 }
  0x44   : > { %1784 = vmatpush3.msra.mxu0 %v2242_v16  ;;  %1820 = vmatprep.subr.mxu1 %v970_v52 }
  0x45   : > { %1785 = vmatprep.subr.mxu0 %v2256_v22  ;;  %1821 = vmatpush3.msra.mxu1 %v970_v52  ;;  %v1012_v38 = vand.u32 4294901760, %v1011_v37  ;;  %v1553_v52 = vld [vmem:[%s2536_s2] ss:$0 sm:$0xff] }
  0x46   : > { %1786 = vmatpush3.msra.mxu0 %v2256_v22  ;;  %1822 = vmatprep.subr.mxu1 %v977_v61 }
  0x47   : > { %1787 = vmatprep.subr.mxu0 %v2272_v28  ;;  %1823 = vmatpush3.msra.mxu1 %v977_v61 }
  0x48   : > { %1788 = vmatpush3.msra.mxu0 %v2272_v28  ;;  %1824 = vmatprep.subr.mxu1 %v984_v12 }
  0x49   : > { %1789 = vmatprep.subr.mxu0 %v2289_v34  ;;  %1825 = vmatpush3.msra.mxu1 %v984_v12 }
  0x4a   : > { %1790 = vmatpush3.msra.mxu0 %v2289_v34  ;;  %1826 = vmatprep.subr.mxu1 %v991_v29 }
  0x4b   : > { %1791 = vmatprep.subr.mxu0 %v2305_v49  ;;  %1827 = vmatpush3.msra.mxu1 %v991_v29 }
  0x4c   : > { %1792 = vmatpush3.msra.mxu0 %v2305_v49  ;;  %1828 = vmatprep.subr.mxu1 %v998_v30 }
  0x4d   : > { %1793 = vmatprep.subr.mxu0 %v2316_v55  ;;  %1829 = vmatpush3.msra.mxu1 %v998_v30 }
  0x4e   : > { %1794 = vmatpush3.msra.mxu0 %v2316_v55  ;;  %1830 = vmatprep.subr.mxu1 %v1005_v36 }
  0x4f   : > { %1795 = vmatprep.subr.mxu0 %v2331_v6  ;;  %1831 = vmatpush3.msra.mxu1 %v1005_v36 }
  0x50   : > { %1796 = vmatpush3.msra.mxu0 %v2331_v6  ;;  %1832 = vmatprep.subr.mxu1 %v1012_v38 }
  0x51   : > { %1797 = vmatprep.subr.mxu0 %v2347_v18  ;;  %1833 = vmatpush3.msra.mxu1 %v1012_v38 }
  0x52   : > { %1798 = vmatpush3.msra.mxu0 %v2347_v18  ;;  %1872 = vmatprep.subr.mxu1 %v2106_v40 }
  0x53   : > { %1837 = vmatprep.subr.mxu0 %v2119_v43 }
  0xde   : > { %v1711_v51 = vpop.f32.mrf.mxu0 }
  0xdf   : > { %v1722_v53 = vpop.f32.mrf.mxu1  ;;  %v334_v61 = vadd.f32 %v1711_v51, %v1553_v52 }
  0xe0   : > { %v323_v58 = vpop.f32.mrf.mxu0 }
  0xe1   : > { %v324_v8 = vadd.f32 %v1553_v52, %v323_v58  ;;  %v424_v12 = vpop.f32.mrf.mxu1  ;;  %v431_v19 = vadd.f32 %v1722_v53, %v334_v61 }
  0xe3   : > { %v425_v30 = vadd.f32 %v424_v12, %v324_v8 }
  0xe7   : > { %v1733_v1 = vpop.f32.mrf.mxu0 }
  0xe8   : > { %v518_v31 = vadd.f32 %v1733_v1, %v431_v19 }
  0xe9   : > { %v1744_v20 = vpop.f32.mrf.mxu1  ;;  %v510_v29 = vpop.f32.mrf.mxu0 }
  0xea   : > { %v511_v36 = vadd.f32 %v510_v29, %v425_v30  ;;  %v603_v38 = vadd.f32 %v1744_v20, %v518_v31 }
  0xeb   : > { %v594_v37 = vpop.f32.mrf.mxu1 }
  0xec   : > { %v595_v13 = vadd.f32 %v594_v37, %v511_v36 }
  0xf1   : > { %v1755_v35 = vpop.f32.mrf.mxu0 }
  0xf2   : > { %v1766_v24 = vpop.f32.mrf.mxu1  ;;  %v692_v7 = vadd.f32 %v1755_v35, %v603_v38 }
  0xf3   : > { %v685_v54 = vpop.f32.mrf.mxu0 }
  0xf4   : > { %v773_v39 = vadd.f32 %v1766_v24, %v692_v7  ;;  %v686_v32 = vadd.f32 %v685_v54, %v595_v13  ;;  %v766_v26 = vpop.f32.mrf.mxu1 }
  0xf6   : > { %v777_v51 = vmax.f32 %v773_v39, 0.0  ;;  %v767_v23 = vadd.f32 %v766_v26, %v686_v32 }
  0xf8   : > { %v2376_v52 = vand.u32 4294901760, %v777_v51  ;;  %v776_v53 = vmax.f32 %v767_v23, 0.0 }
  0xfa   : > { %v2379_v58 = vsub.f32 %v777_v51, %v2376_v52  ;;  %v2381_v61 = vand.u32 4294901760, %v776_v53 }
  0xfc   : > { %v894_v1 = vand.u32 4294901760, %v2379_v58  ;;  %v883_v8 = vsub.f32 %v776_v53, %v2381_v61  ;;  %1834 = vmatprep.mubr.f32.mxu1 %v2381_v61 }
  0xfd   : > { %1835 = vmatmul.mubr.f32.vlgmr.msra.gmra.mxu1 %v2376_v52 }
  0xfe   : > { %1873 = vmatpush3.msra.mxu1 %v2106_v40  ;;  %v884_v39 = vand.u32 4294901760, %v883_v8  ;;  %v895_v23 = vsub.f32 %v2379_v58, %v894_v1 }
  0xff   : > { %1874 = vmatprep.subr.mxu1 %v2113_v42 }
 0x100   : > { %1875 = vmatpush3.msra.mxu1 %v2113_v42  ;;  %1904 = vmatprep.mubr.f32.mxu1 %v884_v39  ;;  %v885_v26 = vsub.f32 %v883_v8, %v884_v39  ;;  %v896_v54 = vand.u32 4294901760, %v895_v23 }
 0x101   : > { %1876 = vmatprep.subr.mxu1 %v2121_v44 }
 0x102   : > { %1877 = vmatpush3.msra.mxu1 %v2121_v44  ;;  %v886_v32 = vand.u32 4294901760, %v885_v26 }
 0x103   : > { %1878 = vmatprep.subr.mxu1 %v2179_v57 }
 0x104   : > { %1879 = vmatpush3.msra.mxu1 %v2179_v57  ;;  %1799 = vmatprep.mubr.f32.mxu0 %v886_v32 }
 0x105   : > { %1880 = vmatprep.subr.mxu1 %v2187_v60  ;;  %1800 = vmatmul.mubr.f32.vlgmr.msra.gmra.mxu0 %v896_v54 }
 0x106   : > { %1838 = vmatpush3.msra.mxu0 %v2119_v43  ;;  %1881 = vmatpush3.msra.mxu1 %v2187_v60  ;;  %v2569_v43 = vld [vmem:[#allocation4_spill] sm:$0xff] }
 0x107   : > { %1839 = vmatprep.subr.mxu0 %v2128_v45  ;;  %1869 = vmatprep.mubr.f32.mxu0 %v883_v8 }
 0x108   : > { %1882 = vmatprep.subr.mxu1 %v2200_v0  ;;  %1840 = vmatpush3.msra.mxu0 %v2128_v45  ;;  %v2571_v45 = vld [vmem:[#allocation6_spill] sm:$0xff] }
 0x109   : > { %1883 = vmatpush3.msra.mxu1 %v2200_v0  ;;  %1841 = vmatprep.subr.mxu0 %v2136_v47 }
 0x10a   : > { %1884 = vmatprep.subr.mxu1 %v2215_v5  ;;  %1842 = vmatpush3.msra.mxu0 %v2136_v47  ;;  %v2573_v47 = vld [vmem:[#allocation8_spill] sm:$0xff] }
 0x10b   : > { %1885 = vmatpush3.msra.mxu1 %v2215_v5  ;;  %1843 = vmatprep.subr.mxu0 %v2185_v59 }
 0x10c   : > { %1886 = vmatprep.subr.mxu1 %v2231_v11  ;;  %1844 = vmatpush3.msra.mxu0 %v2185_v59  ;;  %v1554_v59 = vld [vmem:[%s2538_s4] ss:$0 sm:$0xff] }
 0x10d   : > { %1887 = vmatpush3.msra.mxu1 %v2231_v11  ;;  %1845 = vmatprep.subr.mxu0 %v2198_v63 }
 0x10e   : > { %1888 = vmatprep.subr.mxu1 %v2242_v16  ;;  %1846 = vmatpush3.msra.mxu0 %v2198_v63 }
 0x10f   : > { %1889 = vmatpush3.msra.mxu1 %v2242_v16  ;;  %1847 = vmatprep.subr.mxu0 %v2213_v4 }
 0x110   : > { %1890 = vmatprep.subr.mxu1 %v2256_v22  ;;  %1848 = vmatpush3.msra.mxu0 %v2213_v4 }
 0x111   : > { %1891 = vmatpush3.msra.mxu1 %v2256_v22  ;;  %1849 = vmatprep.subr.mxu0 %v2228_v10 }
 0x112   : > { %1892 = vmatprep.subr.mxu1 %v2272_v28  ;;  %1850 = vmatpush3.msra.mxu0 %v2228_v10 }
 0x113   : > { %1893 = vmatpush3.msra.mxu1 %v2272_v28  ;;  %1851 = vmatprep.subr.mxu0 %v2245_v17 }
 0x114   : > { %1894 = vmatprep.subr.mxu1 %v2289_v34  ;;  %1852 = vmatpush3.msra.mxu0 %v2245_v17 }
 0x115   : > { %1895 = vmatpush3.msra.mxu1 %v2289_v34  ;;  %1853 = vmatprep.subr.mxu0 %v2254_v21 }
 0x116   : > { %1896 = vmatprep.subr.mxu1 %v2305_v49  ;;  %1854 = vmatpush3.msra.mxu0 %v2254_v21 }
 0x117   : > { %1897 = vmatpush3.msra.mxu1 %v2305_v49  ;;  %1855 = vmatprep.subr.mxu0 %v2270_v27 }
 0x118   : > { %1898 = vmatprep.subr.mxu1 %v2316_v55  ;;  %1856 = vmatpush3.msra.mxu0 %v2270_v27 }
 0x119   : > { %1899 = vmatpush3.msra.mxu1 %v2316_v55  ;;  %1857 = vmatprep.subr.mxu0 %v2287_v33 }
 0x11a   : > { %1900 = vmatprep.subr.mxu1 %v2331_v6  ;;  %1858 = vmatpush3.msra.mxu0 %v2287_v33 }
 0x11b   : > { %1901 = vmatpush3.msra.mxu1 %v2331_v6  ;;  %1859 = vmatprep.subr.mxu0 %v2302_v41 }
 0x11c   : > { %1902 = vmatprep.subr.mxu1 %v2347_v18  ;;  %1860 = vmatpush3.msra.mxu0 %v2302_v41 }
 0x11d   : > { %1903 = vmatpush3.msra.mxu1 %v2347_v18  ;;  %1861 = vmatprep.subr.mxu0 %v2320_v56 }
 0x11e   : > { %1905 = vmatmul.mubr.f32.vlgmr.msra.gmra.mxu1 %v894_v1  ;;  %1942 = vmatprep.subr.mxu1 %v2106_v40 }
 0x11f   : > { %1862 = vmatpush3.msra.mxu0 %v2320_v56  ;;  %1943 = vmatpush3.msra.mxu1 %v2106_v40  ;;  %v2567_v40 = vld [vmem:[#allocation2_spill] sm:$0xff] }
 0x120   : > { %1974 = vmatprep.mubr.f32.mxu1 %v2381_v61  ;;  %1863 = vmatprep.subr.mxu0 %v2329_v2 }
 0x121   : > { %1944 = vmatprep.subr.mxu1 %v2113_v42  ;;  %1864 = vmatpush3.msra.mxu0 %v2329_v2 }
 0x122   : > { %1945 = vmatpush3.msra.mxu1 %v2113_v42  ;;  %1865 = vmatprep.subr.mxu0 %v2345_v14  ;;  %v2568_v42 = vld [vmem:[#allocation3_spill] sm:$0xff] }
 0x123   : > { %1946 = vmatprep.subr.mxu1 %v2121_v44  ;;  %1866 = vmatpush3.msra.mxu0 %v2345_v14 }
 0x124   : > { %1947 = vmatpush3.msra.mxu1 %v2121_v44  ;;  %1867 = vmatprep.subr.mxu0 %v2359_v25  ;;  %v2570_v44 = vld [vmem:[#allocation5_spill] sm:$0xff] }
 0x125   : > { %1948 = vmatprep.subr.mxu1 %v2179_v57  ;;  %1868 = vmatpush3.msra.mxu0 %v2359_v25 }
 0x126   : > { %1949 = vmatpush3.msra.mxu1 %v2179_v57  ;;  %1870 = vmatmul.mubr.f32.vlgmr.msra.gmra.mxu0 %v2379_v58 }
 0x127   : > { %1907 = vmatprep.subr.mxu0 %v2133_v46  ;;  %1950 = vmatprep.subr.mxu1 %v2187_v60 }
 0x128   : > { %1908 = vmatpush3.msra.mxu0 %v2133_v46  ;;  %1939 = vmatprep.mubr.f32.mxu0 %v2381_v61  ;;  %v2572_v46 = vld [vmem:[#allocation7_spill] sm:$0xff] }
 0x129   : > { %1951 = vmatpush3.msra.mxu1 %v2187_v60  ;;  %1909 = vmatprep.subr.mxu0 %v2141_v48 }
 0x12a   : > { %1952 = vmatprep.subr.mxu1 %v2200_v0  ;;  %1910 = vmatpush3.msra.mxu0 %v2141_v48  ;;  %v2574_v48 = vld [vmem:[#allocation9_spill] sm:$0xff] }
 0x12b   : > { %1953 = vmatpush3.msra.mxu1 %v2200_v0  ;;  %1911 = vmatprep.subr.mxu0 %v2150_v50 }
 0x12c   : > { %1954 = vmatprep.subr.mxu1 %v2215_v5  ;;  %1912 = vmatpush3.msra.mxu0 %v2150_v50  ;;  %v2575_v50 = vld [vmem:[#allocation10_spill] sm:$0xff] }
 0x12d   : > { %1955 = vmatpush3.msra.mxu1 %v2215_v5  ;;  %1913 = vmatprep.subr.mxu0 %v2195_v62 }
 0x12e   : > { %1956 = vmatprep.subr.mxu1 %v2231_v11  ;;  %1914 = vmatpush3.msra.mxu0 %v2195_v62 }
 0x12f   : > { %1957 = vmatpush3.msra.mxu1 %v2231_v11  ;;  %1915 = vmatprep.subr.mxu0 %v2210_v3 }
 0x130   : > { %1958 = vmatprep.subr.mxu1 %v2242_v16  ;;  %1916 = vmatpush3.msra.mxu0 %v2210_v3 }
 0x131   : > { %1959 = vmatpush3.msra.mxu1 %v2242_v16  ;;  %1917 = vmatprep.subr.mxu0 %v2225_v9 }
 0x132   : > { %1960 = vmatprep.subr.mxu1 %v2256_v22  ;;  %1918 = vmatpush3.msra.mxu0 %v2225_v9 }
 0x133   : > { %1961 = vmatpush3.msra.mxu1 %v2256_v22  ;;  %1919 = vmatprep.subr.mxu0 %v2240_v15 }
 0x134   : > { %1962 = vmatprep.subr.mxu1 %v2272_v28  ;;  %1920 = vmatpush3.msra.mxu0 %v2240_v15 }
 0x135   : > { %1963 = vmatpush3.msra.mxu1 %v2272_v28  ;;  %1921 = vmatprep.subr.mxu0 %v2567_v40 }
 0x136   : > { %1964 = vmatprep.subr.mxu1 %v2289_v34  ;;  %1922 = vmatpush3.msra.mxu0 %v2567_v40 }
 0x137   : > { %1965 = vmatpush3.msra.mxu1 %v2289_v34  ;;  %1923 = vmatprep.subr.mxu0 %v2568_v42 }
 0x138   : > { %1966 = vmatprep.subr.mxu1 %v2305_v49  ;;  %1924 = vmatpush3.msra.mxu0 %v2568_v42 }
 0x139   : > { %1967 = vmatpush3.msra.mxu1 %v2305_v49  ;;  %1925 = vmatprep.subr.mxu0 %v2569_v43 }
 0x13a   : > { %1968 = vmatprep.subr.mxu1 %v2316_v55  ;;  %1926 = vmatpush3.msra.mxu0 %v2569_v43 }
 0x13b   : > { %1969 = vmatpush3.msra.mxu1 %v2316_v55  ;;  %1927 = vmatprep.subr.mxu0 %v2570_v44 }
 0x13c   : > { %1970 = vmatprep.subr.mxu1 %v2331_v6  ;;  %1928 = vmatpush3.msra.mxu0 %v2570_v44 }
 0x13d   : > { %1971 = vmatpush3.msra.mxu1 %v2331_v6  ;;  %1929 = vmatprep.subr.mxu0 %v2571_v45 }
 0x13e   : > { %1972 = vmatprep.subr.mxu1 %v2347_v18  ;;  %1930 = vmatpush3.msra.mxu0 %v2571_v45 }
 0x13f   : > { %1973 = vmatpush3.msra.mxu1 %v2347_v18  ;;  %1931 = vmatprep.subr.mxu0 %v2572_v46 }
 0x140   : > { %1975 = vmatmul.mubr.f32.vlgmr.msra.gmra.mxu1 %v2376_v52  ;;  %1932 = vmatpush3.msra.mxu0 %v2572_v46 }
 0x141   : > { %1933 = vmatprep.subr.mxu0 %v2573_v47 }
 0x142   : > { %1934 = vmatpush3.msra.mxu0 %v2573_v47 }
 0x143   : > { %1935 = vmatprep.subr.mxu0 %v2574_v48 }
 0x144   : > { %1936 = vmatpush3.msra.mxu0 %v2574_v48 }
 0x145   : > { %1937 = vmatprep.subr.mxu0 %v2575_v50 }
 0x146   : > { %1938 = vmatpush3.msra.mxu0 %v2575_v50 }
 0x147   : > { %1940 = vmatmul.mubr.f32.vlgmr.msra.gmra.mxu0 %v2376_v52 }
 0x1bd   : > { %v1836_v60 = vpop.f32.mrf.mxu1 }
 0x1bf   : > { %v1049_v4 = vpop.f32.mrf.mxu1 }
 0x1c5   : > { %v1801_v57 = vpop.f32.mrf.mxu0 }
 0x1c6   : > { %v899_v63 = vadd.f32 %v1801_v57, %v1554_v59 }
 0x1c7   : > { %v888_v62 = vpop.f32.mrf.mxu0 }
 0x1c8   : > { %v889_v3 = vadd.f32 %v1554_v59, %v888_v62  ;;  %v1056_v9 = vadd.f32 %v1836_v60, %v899_v63 }
 0x1ca   : > { %v1050_v11 = vadd.f32 %v1049_v4, %v889_v3 }
 0x1de   : > { %v1906_v5 = vpop.f32.mrf.mxu1 }
 0x1e0   : > { %v1255_v17 = vpop.f32.mrf.mxu1 }
 0x1e6   : > { %v1871_v0 = vpop.f32.mrf.mxu0 }
 0x1e7   : > { %v1167_v15 = vadd.f32 %v1871_v0, %v1056_v9 }
 0x1e8   : > { %v1159_v10 = vpop.f32.mrf.mxu0 }
 0x1e9   : > { %v1160_v16 = vadd.f32 %v1159_v10, %v1050_v11  ;;  %v1264_v22 = vadd.f32 %v1906_v5, %v1167_v15 }
 0x1eb   : > { %v1256_v28 = vadd.f32 %v1255_v17, %v1160_v16 }
 0x200   : > { %v1976_v21 = vpop.f32.mrf.mxu1 }
 0x202   : > { %v1475_v49 = vpop.f32.mrf.mxu1 }
 0x207   : > { %v1941_v27 = vpop.f32.mrf.mxu0 }
 0x208   : > { %v1389_v33 = vadd.f32 %v1941_v27, %v1264_v22 }
 0x209   : > { %v1382_v34 = vpop.f32.mrf.mxu0 }
 0x20a   : > { %v1383_v41 = vadd.f32 %v1382_v34, %v1256_v28  ;;  %v1482_v56 = vadd.f32 %v1976_v21, %v1389_v33 }
 0x20c   : > { %v1476_v55 = vadd.f32 %v1475_v49, %v1383_v41  ;;  %1487 = vst.msk [vmem:[%s226_s25 + $0x8] sm:$0xff] %vm1485_vm1, %v1482_v56 }
 0x20e   : > { %1486 = vst.msk [vmem:[%s226_s25] sm:$0xff] %vm1485_vm1, %v1476_v55 }
 0x20f PF: > { %s15_s18 = sadd.s32 1, %s1991_s18  }
 0x210   : > { %p12_p4 = scmp.ge.s32.totalorder %s15_s18, 4  }
 0x212   :  { %14 = sbr.rel (!%p12_p4) target bundleno = 1 (0x1), region = 70 }

</bundles_post_ra>
